<compile_context>
chip_gen: v6e
topology: v6e:2x2x1
jax: 0.10.0
libtpu: 0.0.40
codegen_flags: <defaults>
</compile_context>

<pallas_src>
from functools import partial

import jax
import jax.numpy as jnp
from jax.experimental import pallas as pl
from jax.experimental.pallas import tpu as pltpu


def _round_up(n, m):
    return ((n + m - 1) // m) * m


def _value_net_kernel(x_ref, w1_ref, b1_ref, w2_ref, b2_ref, w3_ref, b3_ref, o_ref):
    # x_ref: (TM, S) f32 (streamed), w* bf16 (VMEM-resident), b1/b2 f32, b3 (1,1) f32 in SMEM.
    x = x_ref[...].astype(jnp.bfloat16)                               # in-kernel cast (VPU, free under mem-bound)
    h1 = jnp.dot(x, w1_ref[...], preferred_element_type=jnp.float32) + b1_ref[...]
    h1 = jnp.maximum(h1, 0.0).astype(jnp.bfloat16)                    # (TM, 64)
    h2 = jnp.dot(h1, w2_ref[...], preferred_element_type=jnp.float32) + b2_ref[...]
    h2 = jnp.maximum(h2, 0.0).astype(jnp.bfloat16)                    # (TM, 64)
    # Final layer, lane-dense: (1,64) contracted with (TM,64) on the feature dim -> (1, TM).
    out_row = jax.lax.dot_general(
        w3_ref[...], h2,
        dimension_numbers=(((1,), (1,)), ((), ())),
        preferred_element_type=jnp.float32,
    )
    o_ref[...] = out_row + b3_ref[0, 0]


def prepare_params(params):
    """One-time cast/reshape of weights (hoisted out of the per-call path)."""
    hidden = params["w1"].shape[1]
    return {
        "w1": params["w1"].astype(jnp.bfloat16),                      # (S, 64)
        "b1": params["b1"].reshape(1, hidden).astype(jnp.float32),    # (1, 64)
        "w2": params["w2"].astype(jnp.bfloat16),                      # (64, 64)
        "b2": params["b2"].reshape(1, hidden).astype(jnp.float32),    # (1, 64)
        "w3_row": params["w3"].reshape(1, hidden).astype(jnp.bfloat16),  # (1, 64)
        "b3": params["b3"].reshape(1, 1).astype(jnp.float32),         # (1, 1) -> SMEM scalar
    }


@partial(jax.jit, static_argnames=("batch_tile",))
def value_network_forward(x, prepared, *, batch_tile=4096):
    """x: (B, state_dim) f32. prepared: output of prepare_params. Returns (B, 1) f32."""
    B, state_dim = x.shape
    hidden = prepared["w1"].shape[1]

    # --- tile selection ---------------------------------------------------
    # Keep >= 2 grid steps when B is large so v7x's two TensorCores both get work.
    tm_split = max(128, _round_up(pl.cdiv(B, 2), 128))
    # VMEM budget cap: double-buffered f32 x tile kept well under the scoped limit on all gens
    # (v5e default 16 MiB, v7x physical 64 MiB shared by 2 cores).
    vmem_budget = 12 * 1024 * 1024
    tm_vmem = max(128, (vmem_budget // (2 * state_dim * 4)) // 128 * 128)
    tm = max(128, min(batch_tile, tm_split, tm_vmem))

    if B < tm:
        # Degenerate single-tile case (tiny batches): pad is a few KB, keeps the block in-bounds.
        x = jnp.pad(x, ((0, tm - B), (0, 0)))
        g = 1
    else:
        # Multi-tile case: no pad pass; the last partial block is clamped by Pallas and its
        # extra rows are discarded by the [:B] slice below (rows are independent).
        g = pl.cdiv(B, tm)

    cost = pl.CostEstimate(
        flops=2 * B * (state_dim * hidden + hidden * hidden + hidden),
        transcendentals=0,
        bytes_accessed=(B * state_dim * 4 + B * 4
                        + (state_dim * hidden + hidden * hidden + hidden) * 2
                        + (2 * hidden + 1) * 4),
    )

    out_rows = pl.pallas_call(
        _value_net_kernel,
        out_shape=jax.ShapeDtypeStruct((g, tm), jnp.float32),
        grid=(g,),
        in_specs=[
            pl.BlockSpec((tm, state_dim), lambda i: (i, 0)),          # x tile (streamed, pipelined)
            pl.BlockSpec((state_dim, hidden), lambda i: (0, 0)),      # w1 (VMEM-resident)
            pl.BlockSpec((1, hidden), lambda i: (0, 0)),              # b1 (resident)
            pl.BlockSpec((hidden, hidden), lambda i: (0, 0)),         # w2 (resident)
            pl.BlockSpec((1, hidden), lambda i: (0, 0)),              # b2 (resident)
            pl.BlockSpec((1, hidden), lambda i: (0, 0)),              # w3 row (resident)
            pl.BlockSpec(memory_space=pltpu.MemorySpace.SMEM),        # b3 scalar
        ],
        out_specs=pl.BlockSpec((1, tm), lambda i: (i, 0)),            # lane-dense per-tile row
        compiler_params=pltpu.CompilerParams(
            dimension_semantics=("parallel",),                        # shard batch tiles across TCs
        ),
        cost_estimate=cost,
    )(x, prepared["w1"], prepared["b1"], prepared["w2"], prepared["b2"],
      prepared["w3_row"], prepared["b3"])

    # (G, TM) row-major == batch order; flatten, drop padding, return as (B, 1).
    return out_rows.reshape(g * tm, 1)[:B]


def init_params(key, state_dim, hidden=64):
    # Deterministic synthetic init (PyTorch-style uniform fan-in bound), not a checkpoint load.
    ks = jax.random.split(key, 6)

    def lin(kw, kb, fan_in, fan_out):
        bound = 1.0 / jnp.sqrt(fan_in)
        w = jax.random.uniform(kw, (fan_in, fan_out), jnp.float32, -bound, bound)
        b = jax.random.uniform(kb, (1, fan_out), jnp.float32, -bound, bound)
        return w, b

    w1, b1 = lin(ks[0], ks[1], state_dim, hidden)
    w2, b2 = lin(ks[2], ks[3], hidden, hidden)
    w3, b3 = lin(ks[4], ks[5], hidden, 1)
    return {"w1": w1, "b1": b1, "w2": w2, "b2": b2, "w3": w3, "b3": b3}


if __name__ == "__main__":
    key = jax.random.PRNGKey(0)
    k_x, k_p = jax.random.split(key)

    B, state_dim = 2, 32
    x = jax.random.normal(k_x, (B, state_dim), jnp.float32)
    params = init_params(k_p, state_dim)
    prepared = prepare_params(params)

    out = jax.block_until_ready(value_network_forward(x, prepared))
    assert out.shape == (B, 1)

    # Reference 1: same bf16 casts as the kernel (tight check of kernel math).
    xb = x.astype(jnp.bfloat16)
    w1b = params["w1"].astype(jnp.bfloat16)
    w2b = params["w2"].astype(jnp.bfloat16)
    w3b = params["w3"].astype(jnp.bfloat16)
    h1 = jnp.maximum(jnp.dot(xb, w1b, preferred_element_type=jnp.float32) + params["b1"], 0.0)
    h1 = h1.astype(jnp.bfloat16)
    h2 = jnp.maximum(jnp.dot(h1, w2b, preferred_element_type=jnp.float32) + params["b2"], 0.0)
    h2 = h2.astype(jnp.bfloat16)
    ref_bf16 = jnp.dot(h2, w3b, preferred_element_type=jnp.float32) + params["b3"]
    assert jnp.allclose(out, ref_bf16, atol=1e-2, rtol=1e-2)

    # Reference 2: full f32 math of the PyTorch module (loose check; kernel streams bf16).
    h1f = jnp.maximum(x @ params["w1"] + params["b1"], 0.0)
    h2f = jnp.maximum(h1f @ params["w2"] + params["b2"], 0.0)
    ref_f32 = h2f @ params["w3"] + params["b3"]
    assert jnp.allclose(out, ref_f32, atol=5e-2, rtol=5e-2)

    print("KERNEL_OK")
</pallas_src>

<mosaic_0001>
module attributes {stable_mosaic.version = 11 : i64} {
  func.func @_value_net_kernel(%arg0: i32, %arg1: memref<128x32xf32, #tpu.memory_space<vmem>>, %arg2: memref<32x64xbf16, #tpu.memory_space<vmem>>, %arg3: memref<1x64xf32, #tpu.memory_space<vmem>>, %arg4: memref<64x64xbf16, #tpu.memory_space<vmem>>, %arg5: memref<1x64xf32, #tpu.memory_space<vmem>>, %arg6: memref<1x64xbf16, #tpu.memory_space<vmem>>, %arg7: memref<1x1xf32, #tpu.memory_space<smem>>, %arg8: memref<1x128xf32, #tpu.memory_space<vmem>>) attributes {dimension_semantics = [#tpu.dimension_semantics<parallel>], iteration_bounds = array<i64: 1>, scalar_prefetch = 0 : i64, scratch_operands = 0 : i64, tpu.core_type = #tpu.core_type<tc>, window_params = [{transform_indices = @transform_0, window_bounds = array<i64: 128, 32>}, {pipeline_mode = #tpu.pipeline_mode<synchronous>, transform_indices = @transform_1, window_bounds = array<i64: 32, 64>}, {pipeline_mode = #tpu.pipeline_mode<synchronous>, transform_indices = @transform_2, window_bounds = array<i64: 1, 64>}, {pipeline_mode = #tpu.pipeline_mode<synchronous>, transform_indices = @transform_3, window_bounds = array<i64: 64, 64>}, {pipeline_mode = #tpu.pipeline_mode<synchronous>, transform_indices = @transform_4, window_bounds = array<i64: 1, 64>}, {pipeline_mode = #tpu.pipeline_mode<synchronous>, transform_indices = @transform_5, window_bounds = array<i64: 1, 64>}, {transform_indices = @transform_6, window_bounds = array<i64: 1, 1>}, {transform_indices = @transform_7, window_bounds = array<i64: 1, 128>}]} {
    %c0 = arith.constant 0 : index
    %c0_0 = arith.constant 0 : index
    %0 = vector.load %arg1[%c0, %c0_0] : memref<128x32xf32, #tpu.memory_space<vmem>>, vector<128x32xf32>
    %1 = arith.truncf %0 : vector<128x32xf32> to vector<128x32xbf16>
    %c0_1 = arith.constant 0 : index
    %c0_2 = arith.constant 0 : index
    %2 = vector.load %arg2[%c0_1, %c0_2] : memref<32x64xbf16, #tpu.memory_space<vmem>>, vector<32x64xbf16>
    %cst = arith.constant dense<0.000000e+00> : vector<128x64xf32>
    %3 = tpu.matmul %1, %2, %cst {dimension_numbers = #tpu.dot_dimension_numbers<[1], [0], [0], [1], [0, 0, 1, 1], [], []>} : vector<128x32xbf16>, vector<32x64xbf16>, vector<128x64xf32> -> vector<128x64xf32>
    %c0_3 = arith.constant 0 : index
    %c0_4 = arith.constant 0 : index
    %4 = vector.load %arg3[%c0_3, %c0_4] : memref<1x64xf32, #tpu.memory_space<vmem>>, vector<1x64xf32>
    %5 = vector.broadcast %4 : vector<1x64xf32> to vector<128x64xf32>
    %6 = arith.addf %3, %5 : vector<128x64xf32>
    %cst_5 = arith.constant 0.000000e+00 : f32
    %7 = vector.broadcast %cst_5 : f32 to vector<128x64xf32>
    %8 = arith.maximumf %6, %7 : vector<128x64xf32>
    %9 = arith.truncf %8 : vector<128x64xf32> to vector<128x64xbf16>
    %c0_6 = arith.constant 0 : index
    %c0_7 = arith.constant 0 : index
    %10 = vector.load %arg4[%c0_6, %c0_7] : memref<64x64xbf16, #tpu.memory_space<vmem>>, vector<64x64xbf16>
    %cst_8 = arith.constant dense<0.000000e+00> : vector<128x64xf32>
    %11 = tpu.matmul %9, %10, %cst_8 {dimension_numbers = #tpu.dot_dimension_numbers<[1], [0], [0], [1], [0, 0, 1, 1], [], []>} : vector<128x64xbf16>, vector<64x64xbf16>, vector<128x64xf32> -> vector<128x64xf32>
    %c0_9 = arith.constant 0 : index
    %c0_10 = arith.constant 0 : index
    %12 = vector.load %arg5[%c0_9, %c0_10] : memref<1x64xf32, #tpu.memory_space<vmem>>, vector<1x64xf32>
    %13 = vector.broadcast %12 : vector<1x64xf32> to vector<128x64xf32>
    %14 = arith.addf %11, %13 : vector<128x64xf32>
    %cst_11 = arith.constant 0.000000e+00 : f32
    %15 = vector.broadcast %cst_11 : f32 to vector<128x64xf32>
    %16 = arith.maximumf %14, %15 : vector<128x64xf32>
    %17 = arith.truncf %16 : vector<128x64xf32> to vector<128x64xbf16>
    %c0_12 = arith.constant 0 : index
    %c0_13 = arith.constant 0 : index
    %18 = vector.load %arg6[%c0_12, %c0_13] : memref<1x64xbf16, #tpu.memory_space<vmem>>, vector<1x64xbf16>
    %cst_14 = arith.constant dense<0.000000e+00> : vector<1x128xf32>
    %19 = tpu.matmul %18, %17, %cst_14 {dimension_numbers = #tpu.dot_dimension_numbers<[1], [1], [0], [0], [0, 0, 1, 0], [], []>} : vector<1x64xbf16>, vector<128x64xbf16>, vector<1x128xf32> -> vector<1x128xf32>
    %c0_15 = arith.constant 0 : index
    %c0_16 = arith.constant 0 : index
    %20 = memref.load %arg7[%c0_15, %c0_16] : memref<1x1xf32, #tpu.memory_space<smem>>
    %21 = vector.broadcast %20 : f32 to vector<1x128xf32>
    %22 = arith.addf %19, %21 : vector<1x128xf32>
    %c0_17 = arith.constant 0 : index
    %c0_18 = arith.constant 0 : index
    %23 = vector.load %arg8[%c0_17, %c0_18] : memref<1x128xf32, #tpu.memory_space<vmem>>, vector<1x128xf32>
    tpu.vector_store %arg8[%c0_17, %c0_18], %22 {strides = array<i32>} : memref<1x128xf32, #tpu.memory_space<vmem>>, vector<1x128xf32>,
    return
  }
  func.func @transform_0(%arg0: i32) -> (i32, i32) {
    %c0_i32 = arith.constant 0 : i32
    %c0_i32_0 = arith.constant 0 : i32
    return %arg0, %c0_i32 : i32, i32
  }
  func.func @transform_1(%arg0: i32) -> (i32, i32) {
    %c0_i32 = arith.constant 0 : i32
    %c0_i32_0 = arith.constant 0 : i32
    %c0_i32_1 = arith.constant 0 : i32
    return %c0_i32, %c0_i32_0 : i32, i32
  }
  func.func @transform_2(%arg0: i32) -> (i32, i32) {
    %c0_i32 = arith.constant 0 : i32
    %c0_i32_0 = arith.constant 0 : i32
    %c0_i32_1 = arith.constant 0 : i32
    return %c0_i32, %c0_i32_0 : i32, i32
  }
  func.func @transform_3(%arg0: i32) -> (i32, i32) {
    %c0_i32 = arith.constant 0 : i32
    %c0_i32_0 = arith.constant 0 : i32
    %c0_i32_1 = arith.constant 0 : i32
    return %c0_i32, %c0_i32_0 : i32, i32
  }
  func.func @transform_4(%arg0: i32) -> (i32, i32) {
    %c0_i32 = arith.constant 0 : i32
    %c0_i32_0 = arith.constant 0 : i32
    %c0_i32_1 = arith.constant 0 : i32
    return %c0_i32, %c0_i32_0 : i32, i32
  }
  func.func @transform_5(%arg0: i32) -> (i32, i32) {
    %c0_i32 = arith.constant 0 : i32
    %c0_i32_0 = arith.constant 0 : i32
    %c0_i32_1 = arith.constant 0 : i32
    return %c0_i32, %c0_i32_0 : i32, i32
  }
  func.func @transform_6(%arg0: i32) -> (i32, i32) {
    %c0_i32 = arith.constant 0 : i32
    %c0_i32_0 = arith.constant 0 : i32
    %c0_i32_1 = arith.constant 0 : i32
    return %c0_i32, %c0_i32_0 : i32, i32
  }
  func.func @transform_7(%arg0: i32) -> (i32, i32) {
    %c0_i32 = arith.constant 0 : i32
    %c0_i32_0 = arith.constant 0 : i32
    return %arg0, %c0_i32 : i32, i32
  }
}

</mosaic_0001>

<bundles_post_ra>
// kernel: value_network_forward.1
= control target key start
LH: loop header
LB: loop body
LE: loop exit
PB: predicated region body
PF: predicated region fallthrough
CT: control target
= control target key end

     0   :  { %vm75_vm0 = vcmask 261120   ;;  %vm260_vm1 = vcmask 523264   ;;  %vm610_vm2 = vmmov 0   ;;  %s784_s1 = inlined_call_operand.vmem [shape: bf16[32,64], index: 1, kind: input, shape index: {}]   ;;  %s785_s0 = inlined_call_operand.vmem [shape: f32[128,32], index: 0, kind: input, shape index: {}]   ;;  %s786_s3 = inlined_call_operand.vmem [shape: bf16[64,64], index: 3, kind: input, shape index: {}]   ;;  %s787_s2 = inlined_call_operand.vmem [shape: f32[1,64], index: 2, kind: input, shape index: {}]   ;;  %s788_s4 = inlined_call_operand.vmem [shape: f32[1,64], index: 4, kind: input, shape index: {}]   ;;  %s789_s5 = inlined_call_operand.vmem [shape: bf16[1,64], index: 5, kind: input, shape index: {}]   ;;  %s790_s6 = inlined_call_operand.<no memory space> [shape: f32[1,1], index: 6, kind: input, shape index: {}]   ;;  %s791_s7 = inlined_call_operand.vmem [shape: f32[1,128], index: 7, kind: output, shape index: {}]  }
   0x1   :  { %v603_v0 = vld [vmem:[%s784_s1 + $0x8] sm:$0xff]   ;;  %v604_v1 = vld [vmem:[%s784_s1] sm:$0xff]   ;;  %v30_v5 = vld [vmem:[%s785_s0 + $0x10] sm:$0xff] }
   0x2   :  { %537 = vmatprep.subr.bf16.mxu1 %v603_v0  ;;  %v28_v2 = vld [vmem:[%s785_s0] sm:$0xff]  ;;  %v29_v3 = vld [vmem:[%s785_s0 + $0x8] sm:$0xff]  ;;  %v31_v6 = vld [vmem:[%s785_s0 + $0x18] sm:$0xff] }
   0x3   :  { %538 = vmatpush3.bf16.msra.mxu1 %v603_v0  ;;  %v44_v4 = vpack.c.bf16 %v29_v3, %v28_v2  ;;  %v32_v7 = vld [vmem:[%s785_s0 + $0x20] sm:$0xff]  ;;  %v33_v8 = vld [vmem:[%s785_s0 + $0x28] sm:$0xff]  ;;  %v45_v9 = vpack.c.bf16 %v31_v6, %v30_v5  ;;  %v605_v11 = vld [vmem:[%s786_s3 + $0x18] sm:$0xff]  }
   0x4   :  { %539 = vmatprep.subr.bf16.mxu1 %v604_v1  ;;  %v46_v10 = vpack.c.bf16 %v33_v8, %v32_v7  ;;  %v606_v12 = vld [vmem:[%s786_s3 + $0x10] sm:$0xff]   ;;  %v35_v14 = vld [vmem:[%s785_s0 + $0x38] sm:$0xff]  ;;  %v36_v15 = vld [vmem:[%s785_s0 + $0x40] sm:$0xff] }
   0x5   :  { %541 = vmatprep.mubr.msk.bf16.mxu1 %vm75_vm0, %v44_v4  ;;  %v34_v13 = vld [vmem:[%s785_s0 + $0x30] sm:$0xff]  ;;  %v37_v16 = vld [vmem:[%s785_s0 + $0x48] sm:$0xff]  ;;  %v39_v21 = vld [vmem:[%s785_s0 + $0x58] sm:$0xff] }
   0x6   :  { %v607_v17 = vld [vmem:[%s786_s3 + $0x8] sm:$0xff]   ;;  %v47_v18 = vpack.c.bf16 %v35_v14, %v34_v13  ;;  %v48_v19 = vpack.c.bf16 %v37_v16, %v36_v15  ;;  %v38_v20 = vld [vmem:[%s785_s0 + $0x50] sm:$0xff]  ;;  %v40_v22 = vld [vmem:[%s785_s0 + $0x60] sm:$0xff] }
   0x7   :  { %540 = vmatpush3.bf16.msra.mxu1 %v604_v1  ;;  %v41_v23 = vld [vmem:[%s785_s0 + $0x68] sm:$0xff]  ;;  %v49_v24 = vpack.c.bf16 %v39_v21, %v38_v20  ;;  %v42_v26 = vld [vmem:[%s785_s0 + $0x70] sm:$0xff]  ;;  %v43_v27 = vld [vmem:[%s785_s0 + $0x78] sm:$0xff] }
   0x8   :  { %557 = vmatprep.subr.bf16.mxu1 %v605_v11  ;;  %v50_v25 = vpack.c.bf16 %v41_v23, %v40_v22  ;;  %v51_v28 = vpack.c.bf16 %v43_v27, %v42_v26  ;;  %v608_v29 = vld [vmem:[%s786_s3] sm:$0xff]   ;;  %v609_v23 = vmov 0.0  }
   0x9   :  { %v481_v32 = vld [vmem:[%s787_s2] ss:$0 sm:$0xff]  ;;  %581 = vmatprep.subr.bf16.mxu0 %v609_v23  ;;  %597 = vmatprep.mubr.msk.bf16.mxu0 %vm610_vm2, %v609_v23 }
   0xa   :  { %542 = vmatmul.mubr.msk.bf16.vlgmr.msra.gmra.mxu1 %vm75_vm0, %v45_v9 }
   0xb   :  { %545 = vmatprep.mubr.msk.bf16.mxu1 %vm75_vm0, %v46_v10  ;;  %558 = vmatpush3.bf16.msra.mxu1 %v605_v11 }
   0xc   :  { %559 = vmatprep.subr.bf16.mxu1 %v606_v12 }
   0xf   :  { %560 = vmatpush3.bf16.msra.mxu1 %v606_v12 }
  0x10   :  { %561 = vmatprep.subr.bf16.mxu1 %v607_v17 }
  0x12   :  { %546 = vmatmul.mubr.msk.bf16.gmra.mxu1 %vm75_vm0, %v47_v18 }
  0x13   :  { %549 = vmatprep.mubr.msk.bf16.mxu1 %vm75_vm0, %v48_v19  ;;  %562 = vmatpush3.bf16.msra.mxu1 %v607_v17 }
  0x14   :  { %563 = vmatprep.subr.bf16.mxu1 %v608_v29 }
  0x17   :  { %564 = vmatpush3.bf16.msra.mxu1 %v608_v29 }
  0x1a   :  { %550 = vmatmul.mubr.msk.bf16.gmra.mxu1 %vm75_vm0, %v49_v24 }
  0x1b   :  { %553 = vmatprep.mubr.msk.bf16.mxu1 %vm75_vm0, %v50_v25  ;;  %v741_v25 = vld [vmem:[%s788_s4] ss:$0 sm:$0xff] }
  0x22   :  { %554 = vmatmul.mubr.msk.bf16.gmra.mxu1 %vm75_vm0, %v51_v28 }
  0xca   :  { %v543_v30 = vpop.f32.mrf.mxu1 }
  0xcb   :  { %v143_v36 = vadd.f32 %v543_v30, %v481_v32 }
  0xcc   :  { %v134_v31 = vpop.f32.mrf.mxu1 }
  0xcd   :  { %v135_v34 = vadd.f32 %v481_v32, %v134_v31  ;;  %v199_v43 = vmax.f32 %v143_v36, 0.0 }
  0xce   :  { %v544_v33 = vpop.f32.mrf.mxu1 }
  0xcf   :  { %v146_v35 = vadd.f32 %v544_v33, %v481_v32  ;;  %v197_v41 = vmax.f32 %v135_v34, 0.0 }
  0xd0   :  { %v137_v37 = vpop.f32.mrf.mxu1 }
  0xd1   :  { %v138_v38 = vadd.f32 %v481_v32, %v137_v37  ;;  %v200_v39 = vmax.f32 %v146_v35, 0.0 }
  0xd2   :  { %v547_v40 = vpop.f32.mrf.mxu1 }
  0xd3   :  { %v198_v42 = vmax.f32 %v138_v38, 0.0  ;;  %v214_v46 = vpack.c.bf16 %v200_v39, %v199_v43  ;;  %v159_v50 = vadd.f32 %v547_v40, %v481_v32 }
  0xd4   :  { %v150_v44 = vpop.f32.mrf.mxu1 }
  0xd5   :  { %v213_v45 = vpack.c.bf16 %v198_v42, %v197_v41  ;;  %v151_v48 = vadd.f32 %v481_v32, %v150_v44  ;;  %v203_v57 = vmax.f32 %v159_v50, 0.0 }
  0xd6   :  { %v548_v47 = vpop.f32.mrf.mxu1 }
  0xd7   :  { %v162_v49 = vadd.f32 %v548_v47, %v481_v32  ;;  %565 = vmatprep.mubr.msk.bf16.mxu1 %vm260_vm1, %v213_v45  ;;  %v201_v55 = vmax.f32 %v151_v48, 0.0 }
  0xd8   :  { %v153_v51 = vpop.f32.mrf.mxu1  ;;  %566 = vmatmul.mubr.msk.bf16.vlgmr.msra.gmra.mxu1 %vm260_vm1, %v214_v46 }
  0xd9   :  { %v154_v52 = vadd.f32 %v481_v32, %v153_v51  ;;  %v204_v53 = vmax.f32 %v162_v49, 0.0 }
  0xda   :  { %v551_v54 = vpop.f32.mrf.mxu1 }
  0xdb   :  { %v202_v56 = vmax.f32 %v154_v52, 0.0  ;;  %v216_v60 = vpack.c.bf16 %v204_v53, %v203_v57  ;;  %v175_v0 = vadd.f32 %v551_v54, %v481_v32 }
  0xdc   :  { %v166_v58 = vpop.f32.mrf.mxu1 }
  0xdd   :  { %v215_v59 = vpack.c.bf16 %v202_v56, %v201_v55  ;;  %v167_v62 = vadd.f32 %v481_v32, %v166_v58  ;;  %v207_v7 = vmax.f32 %v175_v0, 0.0 }
  0xde   :  { %v552_v61 = vpop.f32.mrf.mxu1 }
  0xdf   :  { %v178_v63 = vadd.f32 %v552_v61, %v481_v32  ;;  %569 = vmatprep.mubr.msk.bf16.mxu1 %vm260_vm1, %v215_v59  ;;  %v205_v5 = vmax.f32 %v167_v62, 0.0 }
  0xe0   :  { %v169_v1 = vpop.f32.mrf.mxu1  ;;  %570 = vmatmul.mubr.msk.bf16.gmra.mxu1 %vm260_vm1, %v216_v60 }
  0xe1   :  { %v170_v2 = vadd.f32 %v481_v32, %v169_v1  ;;  %v208_v3 = vmax.f32 %v178_v63, 0.0 }
  0xe2   :  { %v555_v4 = vpop.f32.mrf.mxu1 }
  0xe3   :  { %v206_v6 = vmax.f32 %v170_v2, 0.0  ;;  %v218_v10 = vpack.c.bf16 %v208_v3, %v207_v7  ;;  %v191_v14 = vadd.f32 %v555_v4, %v481_v32 }
  0xe4   :  { %v182_v8 = vpop.f32.mrf.mxu1 }
  0xe5   :  { %v217_v9 = vpack.c.bf16 %v206_v6, %v205_v5  ;;  %v183_v12 = vadd.f32 %v481_v32, %v182_v8  ;;  %v211_v20 = vmax.f32 %v191_v14, 0.0 }
  0xe6   :  { %v556_v11 = vpop.f32.mrf.mxu1 }
  0xe7   :  { %v194_v13 = vadd.f32 %v556_v11, %v481_v32  ;;  %573 = vmatprep.mubr.msk.bf16.mxu1 %vm260_vm1, %v217_v9  ;;  %v209_v18 = vmax.f32 %v183_v12, 0.0 }
  0xe8   :  { %v185_v15 = vpop.f32.mrf.mxu1  ;;  %574 = vmatmul.mubr.msk.bf16.gmra.mxu1 %vm260_vm1, %v218_v10 }
  0xe9   :  { %v186_v16 = vadd.f32 %v481_v32, %v185_v15  ;;  %v212_v17 = vmax.f32 %v194_v13, 0.0 }
  0xeb   :  { %v210_v19 = vmax.f32 %v186_v16, 0.0  ;;  %v220_v22 = vpack.c.bf16 %v212_v17, %v211_v20 }
  0xed   :  { %v219_v21 = vpack.c.bf16 %v210_v19, %v209_v18 }
  0xef   :  { %577 = vmatprep.mubr.msk.bf16.mxu1 %vm260_vm1, %v219_v21 }
  0xf0   :  { %578 = vmatmul.mubr.msk.bf16.gmra.mxu1 %vm260_vm1, %v220_v22 }
 0x198   :  { %v567_v24 = vpop.f32.mrf.mxu1 }
 0x199   :  { %v328_v27 = vadd.f32 %v567_v24, %v741_v25 }
 0x19a   :  { %v319_v26 = vpop.f32.mrf.mxu1 }
 0x19b   :  { %v320_v29 = vadd.f32 %v741_v25, %v319_v26  ;;  %v384_v32 = vmax.f32 %v328_v27, 0.0  ;;  %v406_v26 = vld [vmem:[%s789_s5] sm:$0x1]  ;;  %v408_v27 = vstv %s790_s6 }
 0x19c   :  { %v568_v28 = vpop.f32.mrf.mxu1 }
 0x19d   :  { %v331_v30 = vadd.f32 %v568_v28, %v741_v25  ;;  %v382_v36 = vmax.f32 %v320_v29, 0.0 }
 0x19e   :  { %v322_v31 = vpop.f32.mrf.mxu1 }
 0x19f   :  { %v385_v33 = vmax.f32 %v331_v30, 0.0  ;;  %v323_v34 = vadd.f32 %v741_v25, %v322_v31 }
 0x1a0   :  { %v571_v35 = vpop.f32.mrf.mxu1 }
 0x1a1   :  { %v399_v37 = vpack.c.bf16 %v385_v33, %v384_v32  ;;  %v383_v38 = vmax.f32 %v323_v34, 0.0  ;;  %v344_v11 = vadd.f32 %v571_v35, %v741_v25 }
 0x1a2   :  { %v335_v39 = vpop.f32.mrf.mxu1 }
 0x1a3   :  { %v398_v40 = vpack.c.bf16 %v383_v38, %v382_v36  ;;  %v388_v14 = vmax.f32 %v344_v11, 0.0  ;;  %v336_v17 = vadd.f32 %v741_v25, %v335_v39  ;;  %v416_v24 = vsel %vm260_vm1, %v399_v37, 0 }
 0x1a4   :  { %v572_v41 = vpop.f32.mrf.mxu1 }
 0x1a5   :  { %v347_v9 = vadd.f32 %v572_v41, %v741_v25  ;;  %v386_v20 = vmax.f32 %v336_v17, 0.0 }
 0x1a6   :  { %v338_v42 = vpop.f32.mrf.mxu1 }
 0x1a7   :  { %v389_v12 = vmax.f32 %v347_v9, 0.0  ;;  %v339_v16 = vadd.f32 %v741_v25, %v338_v42 }
 0x1a8   :  { %v575_v43 = vpop.f32.mrf.mxu1 }
 0x1a9   :  { %v360_v63 = vadd.f32 %v575_v43, %v741_v25  ;;  %v401_v15 = vpack.c.bf16 %v389_v12, %v388_v14  ;;  %v387_v18 = vmax.f32 %v339_v16, 0.0 }
 0x1aa   :  { %v351_v44 = vpop.f32.mrf.mxu1 }
 0x1ab   :  { %v392_v2 = vmax.f32 %v360_v63, 0.0  ;;  %v352_v5 = vadd.f32 %v741_v25, %v351_v44  ;;  %v422_v19 = vsel %vm260_vm1, %v401_v15, 0  ;;  %v400_v21 = vpack.c.bf16 %v387_v18, %v386_v20 }
 0x1ac   :  { %v576_v45 = vpop.f32.mrf.mxu1 }
 0x1ad   :  { %v363_v61 = vadd.f32 %v576_v45, %v741_v25  ;;  %v390_v8 = vmax.f32 %v352_v5, 0.0  ;;  %v419_v22 = vsel %vm260_vm1, %v400_v21, 0 }
 0x1ae   :  { %v354_v46 = vpop.f32.mrf.mxu1 }
 0x1af   :  { %v393_v0 = vmax.f32 %v363_v61, 0.0  ;;  %v355_v4 = vadd.f32 %v741_v25, %v354_v46 }
 0x1b0   :  { %v579_v47 = vpop.f32.mrf.mxu1 }
 0x1b1   :  { %v376_v49 = vadd.f32 %v579_v47, %v741_v25  ;;  %v403_v3 = vpack.c.bf16 %v393_v0, %v392_v2  ;;  %v391_v6 = vmax.f32 %v355_v4, 0.0 }
 0x1b2   :  { %v367_v48 = vpop.f32.mrf.mxu1 }
 0x1b3   :  { %v396_v53 = vmax.f32 %v376_v49, 0.0  ;;  %v368_v56 = vadd.f32 %v741_v25, %v367_v48  ;;  %v428_v7 = vsel %vm260_vm1, %v403_v3, 0  ;;  %v402_v10 = vpack.c.bf16 %v391_v6, %v390_v8 }
 0x1b4   :  { %v580_v50 = vpop.f32.mrf.mxu1 }
 0x1b5   :  { %v379_v51 = vadd.f32 %v580_v50, %v741_v25  ;;  %v394_v60 = vmax.f32 %v368_v56, 0.0  ;;  %v425_v13 = vsel %vm260_vm1, %v402_v10, 0 }
 0x1b6   :  { %v370_v52 = vpop.f32.mrf.mxu1 }
 0x1b7   :  { %v397_v54 = vmax.f32 %v379_v51, 0.0  ;;  %v371_v55 = vadd.f32 %v741_v25, %v370_v52  ;;  %v413_v25 = vsel %vm260_vm1, %v398_v40, 0 }
 0x1b9   :  { %v405_v57 = vpack.c.bf16 %v397_v54, %v396_v53  ;;  %v395_v58 = vmax.f32 %v371_v55, 0.0 }
 0x1bb   :  { %v434_v59 = vsel %vm260_vm1, %v405_v57, 0  ;;  %v404_v62 = vpack.c.bf16 %v395_v58, %v394_v60 }
 0x1bc   :  { %582 = vmatpush3.bf16.xpose.msra.mxu0 %v434_v59 }
 0x1bd   :  { %583 = vmatprep.subr.bf16.mxu0 %v609_v23  ;;  %v431_v1 = vsel %vm260_vm1, %v404_v62, 0 }
 0x1c4   :  { %584 = vmatpush3.bf16.xpose.msra.mxu0 %v431_v1 }
 0x1c5   :  { %585 = vmatprep.subr.bf16.mxu0 %v609_v23 }
 0x1cc   :  { %586 = vmatpush3.bf16.xpose.msra.mxu0 %v428_v7 }
 0x1cd   :  { %587 = vmatprep.subr.bf16.mxu0 %v609_v23 }
 0x1d4   :  { %588 = vmatpush3.bf16.xpose.msra.mxu0 %v425_v13 }
 0x1d5   :  { %589 = vmatprep.subr.bf16.mxu0 %v609_v23 }
 0x1dc   :  { %590 = vmatpush3.bf16.xpose.msra.mxu0 %v422_v19 }
 0x1dd   :  { %591 = vmatprep.subr.bf16.mxu0 %v609_v23 }
 0x1e4   :  { %592 = vmatpush3.bf16.xpose.msra.mxu0 %v419_v22 }
 0x1e5   :  { %593 = vmatprep.subr.bf16.mxu0 %v609_v23 }
 0x1ec   :  { %594 = vmatpush3.bf16.xpose.msra.mxu0 %v416_v24 }
 0x1ed   :  { %595 = vmatprep.subr.bf16.mxu0 %v609_v23 }
 0x1f4   :  { %596 = vmatpush3.bf16.xpose.msra.mxu0 %v413_v25 }
 0x1fb   :  { %598 = vmatmul.mubr.msk.bf16.vlgmr.msra.gmra.mxu0 %vm260_vm1, %v406_v26 }
 0x2bb   :  { %v470_v28 = vpop.f32.mrf.mxu0 }
 0x2bc   :  { %v471_v29 = vadd.f32 %v470_v28, %v408_v27 }
 0x2bd   :  { %v599_v30 = vpop.f32.mrf.mxu0 }
 0x2be   :  { %476 = vst [vmem:[%s791_s7] sm:$0x1] %v471_v29 }
 0x2bf   :  { %v473_v23 = vpop.f32.mrf.mxu0 }
 0x2c1   :  { %v600_v31 = vpop.f32.mrf.mxu0 }

</bundles_post_ra>
